<compile_context>
chip_gen: v6e
topology: v6e:2x2x1
jax: 0.10.0
libtpu: 0.0.40
codegen_flags: <defaults>
</compile_context>

<pallas_src>
import math

import jax
import jax.numpy as jnp
from jax.experimental import pallas as pl
from jax.experimental.pallas import tpu as pltpu


_MAX_TM = 256                    # MXU M on v6e/v7x (2x v5e's 128)
_MAX_TK = 1024                   # keeps v7x (64 MiB VMEM) comfortable
_MAX_TN = 2048                   # lane-dense output slabs
_VMEM_LIMIT = 48 * 1024 * 1024   # safe on v5e/v6e (128 MiB) and v7x (64 MiB)


def _cdiv(a, b):
    return -(-a // b)


def _round_up(x, m):
    return _cdiv(x, m) * m


def _pick_tile(dim, unit, max_tile):
    """Pad `dim` to a multiple of `unit`, then pick the smallest unit-multiple
    tile whose step count equals cdiv(padded, max_tile).  Minimizes padding."""
    dim_p0 = _round_up(max(dim, 1), unit)
    steps = _cdiv(dim_p0, max_tile)
    tile = _round_up(_cdiv(dim_p0, steps), unit)
    return tile, tile * steps, steps


# ----------------------------- kernels ---------------------------------------


def _svd_kernel_1k(w_ref, x_ref, b_ref, o_ref):
    # Single k step: no accumulator scratch, no zero-fill, single output pass.
    o_ref[...] = (
        jnp.dot(w_ref[...], x_ref[...], preferred_element_type=jnp.float32)
        + b_ref[...]
    ).astype(o_ref.dtype)


def _make_acc_kernel(k_axis):
    # Multi-step reduction over ih: f32 VMEM accumulator, bias+cast epilogue.
    def kernel(w_ref, x_ref, b_ref, o_ref, acc_ref):
        k = pl.program_id(k_axis)

        @pl.when(k == 0)
        def _():
            acc_ref[...] = jnp.zeros_like(acc_ref)

        acc_ref[...] += jnp.dot(
            w_ref[...], x_ref[...], preferred_element_type=jnp.float32
        )

        @pl.when(k == pl.num_programs(k_axis) - 1)
        def _():
            # bias add + cast kept in f32 (v5e has no bf16 VPU).
            o_ref[...] = (acc_ref[...] + b_ref[...]).astype(o_ref.dtype)

    return kernel


# ----------------------------- wrapper ----------------------------------------


def left_svd_layer(x, weight, bias=None, *, compute_dtype=jnp.bfloat16,
                   out_dtype=None):
    """y[..., :, :] = weight @ x[..., :, :] + bias  (bias broadcast over W)."""
    oh, ih = weight.shape
    *batch, ih_x, W = x.shape
    assert ih_x == ih, (ih_x, ih)
    if out_dtype is None:
        out_dtype = x.dtype
    if bias is None:
        bias = jnp.zeros((oh, 1), jnp.float32)
    assert bias.shape == (oh, 1)

    B = 1
    for d in batch:
        B *= d

    # ---- padding-aware tile selection ----------------------------------------
    tm, oh_p, m_steps = _pick_tile(oh, 16, _MAX_TM)     # 16 = bf16 sublane pack
    tk, ih_p, k_steps = _pick_tile(ih, 128, _MAX_TK)

    # Lane-dense W: keep the batch as a grid axis (no extra transpose pass of x
    # and y through HBM).  Lane-sparse W: fold the batch into the lane axis so
    # output stores stay unmasked and the MXU N dimension is full.
    batched = bool(batch) and (W % 128 == 0)
    N = W if batched else B * W
    tn, n_p, n_steps = _pick_tile(N, 128, _MAX_TN)

    # v7x has 2 TensorCores fed via the parallel grid axes: guarantee >=2
    # parallel steps whenever the problem allows it.
    par_steps = m_steps * n_steps * (B if batched else 1)
    if par_steps == 1 and n_p >= 256:
        tn = _round_up(_cdiv(n_p, 2), 128)
        n_steps, n_p = 2, 2 * tn

    # ---- pad operands (zero ih-padding contributes nothing to the matmul) ----
    w_p = jnp.pad(weight.astype(compute_dtype),
                  ((0, oh_p - oh), (0, ih_p - ih)))
    b_p = jnp.pad(bias.astype(jnp.float32), ((0, oh_p - oh), (0, 0)))

    itemsize_c = jnp.dtype(compute_dtype).itemsize
    itemsize_o = jnp.dtype(out_dtype).itemsize
    n_total = (B * n_p) if batched else n_p
    cost = pl.CostEstimate(
        flops=2 * oh_p * ih_p * n_total,
        transcendentals=0,
        bytes_accessed=(oh_p * ih_p * itemsize_c
                        + ih_p * n_total * itemsize_c
                        + oh_p * n_total * itemsize_o),
    )
    params_2 = pltpu.CompilerParams(
        dimension_semantics=("parallel", "parallel"),
        vmem_limit_bytes=_VMEM_LIMIT)
    params_3 = pltpu.CompilerParams(
        dimension_semantics=("parallel", "parallel", "arbitrary"),
        vmem_limit_bytes=_VMEM_LIMIT)
    params_b3 = pltpu.CompilerParams(
        dimension_semantics=("parallel", "parallel", "parallel"),
        vmem_limit_bytes=_VMEM_LIMIT)
    params_b4 = pltpu.CompilerParams(
        dimension_semantics=("parallel", "parallel", "parallel", "arbitrary"),
        vmem_limit_bytes=_VMEM_LIMIT)

    if not batched:
        # ---- fold batch into lanes: (..., ih, W) -> (ih, B*W) ----------------
        x2d = jnp.transpose(x.reshape(B, ih, W), (1, 0, 2)).reshape(ih, N)
        x_p = jnp.pad(x2d.astype(compute_dtype),
                      ((0, ih_p - ih), (0, n_p - N)))

        if k_steps == 1:
            # Grid (n, m): x block index independent of m -> x streamed once.
            y2d = pl.pallas_call(
                _svd_kernel_1k,
                out_shape=jax.ShapeDtypeStruct((oh_p, n_p), out_dtype),
                grid_spec=pltpu.PrefetchScalarGridSpec(
                    num_scalar_prefetch=0,
                    grid=(n_steps, m_steps),
                    in_specs=[
                        pl.BlockSpec((tm, ih_p), lambda n, m: (m, 0)),
                        pl.BlockSpec((ih_p, tn), lambda n, m: (0, n)),
                        pl.BlockSpec((tm, 1), lambda n, m: (m, 0)),
                    ],
                    out_specs=pl.BlockSpec((tm, tn), lambda n, m: (m, n)),
                ),
                compiler_params=params_2,
                cost_estimate=cost,
            )(w_p, x_p, b_p)
        else:
            y2d = pl.pallas_call(
                _make_acc_kernel(2),
                out_shape=jax.ShapeDtypeStruct((oh_p, n_p), out_dtype),
                grid_spec=pltpu.PrefetchScalarGridSpec(
                    num_scalar_prefetch=0,
                    grid=(m_steps, n_steps, k_steps),
                    in_specs=[
                        pl.BlockSpec((tm, tk), lambda m, n, k: (m, k)),
                        pl.BlockSpec((tk, tn), lambda m, n, k: (k, n)),
                        pl.BlockSpec((tm, 1), lambda m, n, k: (m, 0)),
                    ],
                    out_specs=pl.BlockSpec((tm, tn), lambda m, n, k: (m, n)),
                    scratch_shapes=[pltpu.VMEM((tm, tn), jnp.float32)],
                ),
                compiler_params=params_3,
                cost_estimate=cost,
            )(w_p, x_p, b_p)

        y = y2d[:oh, :N].reshape(oh, B, W).transpose(1, 0, 2)
        return y.reshape(*batch, oh, W)

    # ---- batched, lane-dense path (no transpose of x / y) ---------------------
    xb = x.reshape(B, ih, W).astype(compute_dtype)
    x_p = jnp.pad(xb, ((0, 0), (0, ih_p - ih), (0, n_p - W)))

    if k_steps == 1:
        yb = pl.pallas_call(
            _svd_kernel_1k,
            out_shape=jax.ShapeDtypeStruct((B, oh_p, n_p), out_dtype),
            grid_spec=pltpu.PrefetchScalarGridSpec(
                num_scalar_prefetch=0,
                grid=(B, n_steps, m_steps),
                in_specs=[
                    pl.BlockSpec((tm, ih_p), lambda b, n, m: (m, 0)),
                    pl.BlockSpec((None, ih_p, tn), lambda b, n, m: (b, 0, n)),
                    pl.BlockSpec((tm, 1), lambda b, n, m: (m, 0)),
                ],
                out_specs=pl.BlockSpec((None, tm, tn),
                                       lambda b, n, m: (b, m, n)),
            ),
            compiler_params=params_b3,
            cost_estimate=cost,
        )(w_p, x_p, b_p)
    else:
        yb = pl.pallas_call(
            _make_acc_kernel(3),
            out_shape=jax.ShapeDtypeStruct((B, oh_p, n_p), out_dtype),
            grid_spec=pltpu.PrefetchScalarGridSpec(
                num_scalar_prefetch=0,
                grid=(B, m_steps, n_steps, k_steps),
                in_specs=[
                    pl.BlockSpec((tm, tk), lambda b, m, n, k: (m, k)),
                    pl.BlockSpec((None, tk, tn), lambda b, m, n, k: (b, k, n)),
                    pl.BlockSpec((tm, 1), lambda b, m, n, k: (m, 0)),
                ],
                out_specs=pl.BlockSpec((None, tm, tn),
                                       lambda b, m, n, k: (b, m, n)),
                scratch_shapes=[pltpu.VMEM((tm, tn), jnp.float32)],
            ),
            compiler_params=params_b4,
            cost_estimate=cost,
        )(w_p, x_p, b_p)

    return yb[:, :oh, :W].reshape(*batch, oh, W)


# ----------------------------- init & test ------------------------------------


def init_params(key, ih, oh, dtype=jnp.float32):
    """Matches nn.init.kaiming_uniform_(a=sqrt(5)) and LeftSVDLayer's bias init."""
    kw, kb = jax.random.split(key)
    w_bound = 1.0 / math.sqrt(ih)               # kaiming_uniform_, a=sqrt(5)
    weight = jax.random.uniform(kw, (oh, ih), dtype, -w_bound, w_bound)
    b_bound = 1.0 / math.sqrt(ih / 2.0)
    bias = jax.random.uniform(kb, (oh, 1), dtype, -b_bound, b_bound)
    return weight, bias


def _check(x, weight, bias, *, loose_f32=False):
    y = jax.block_until_ready(left_svd_layer(x, weight, bias))
    B_shape = x.shape[:-2]
    oh = weight.shape[0]
    W = x.shape[-1]
    assert y.shape == (*B_shape, oh, W), y.shape
    # tight check vs. a reference with the same bf16 operand quantization
    w_q = weight.astype(jnp.bfloat16).astype(jnp.float32)
    x_q = x.astype(jnp.bfloat16).astype(jnp.float32)
    y_ref_q = jnp.einsum("oi,...iw->...ow", w_q, x_q) + bias
    assert jnp.allclose(y, y_ref_q, atol=5e-3, rtol=5e-3)
    if loose_f32:
        y_ref = jnp.einsum("oi,...iw->...ow", weight, x) + bias
        assert jnp.allclose(y, y_ref, atol=3e-2, rtol=3e-2)
    return y


if __name__ == "__main__":
    key = jax.random.PRNGKey(0)
    k_x, k_p, k_x2, k_p2 = jax.random.split(key, 4)

    # 1) lane-sparse W (fold path), single k step
    B, ih, oh, W = 2, 32, 16, 8
    x = jax.random.normal(k_x, (B, ih, W), jnp.float32)
    weight, bias = init_params(k_p, ih, oh)
    _check(x, weight, bias, loose_f32=True)

    # 2) lane-dense W (batched path with squeezed batch dim), single k step
    x = jax.random.normal(k_x, (B, ih, 128), jnp.float32)
    _check(x, weight, bias, loose_f32=True)

    # 3) fold path with a multi-step ih reduction (accumulator kernel)
    ih_big = 1152
    weight2, bias2 = init_params(k_p2, ih_big, oh)
    x = jax.random.normal(k_x2, (B, ih_big, W), jnp.float32)
    _check(x, weight2, bias2)

    # 4) batched path with a multi-step ih reduction
    x = jax.random.normal(k_x2, (B, ih_big, 128), jnp.float32)
    _check(x, weight2, bias2)

    print("KERNEL_OK")
</pallas_src>

<mosaic_0001>
module attributes {stable_mosaic.version = 11 : i64} {
  func.func @_svd_kernel_1k(%arg0: i32, %arg1: i32, %arg2: memref<16x128xbf16, #tpu.memory_space<vmem>>, %arg3: memref<128x128xbf16, #tpu.memory_space<vmem>>, %arg4: memref<16x1xf32, #tpu.memory_space<vmem>>, %arg5: memref<16x128xf32, #tpu.memory_space<vmem>>) attributes {dimension_semantics = [#tpu.dimension_semantics<parallel>, #tpu.dimension_semantics<parallel>], iteration_bounds = array<i64: 1, 1>, scalar_prefetch = 0 : i64, scratch_operands = 0 : i64, tpu.core_type = #tpu.core_type<tc>, window_params = [{transform_indices = @transform_0, window_bounds = array<i64: 16, 128>}, {transform_indices = @transform_1, window_bounds = array<i64: 128, 128>}, {transform_indices = @transform_2, window_bounds = array<i64: 16, 1>}, {transform_indices = @transform_3, window_bounds = array<i64: 16, 128>}]} {
    %c0 = arith.constant 0 : index
    %c0_0 = arith.constant 0 : index
    %0 = vector.load %arg2[%c0, %c0_0] : memref<16x128xbf16, #tpu.memory_space<vmem>>, vector<16x128xbf16>
    %c0_1 = arith.constant 0 : index
    %c0_2 = arith.constant 0 : index
    %1 = vector.load %arg3[%c0_1, %c0_2] : memref<128x128xbf16, #tpu.memory_space<vmem>>, vector<128x128xbf16>
    %cst = arith.constant dense<0.000000e+00> : vector<16x128xf32>
    %2 = tpu.matmul %0, %1, %cst {dimension_numbers = #tpu.dot_dimension_numbers<[1], [0], [0], [1], [0, 0, 1, 1], [], []>} : vector<16x128xbf16>, vector<128x128xbf16>, vector<16x128xf32> -> vector<16x128xf32>
    %c0_3 = arith.constant 0 : index
    %c0_4 = arith.constant 0 : index
    %3 = vector.load %arg4[%c0_3, %c0_4] : memref<16x1xf32, #tpu.memory_space<vmem>>, vector<16x1xf32>
    %4 = vector.broadcast %3 : vector<16x1xf32> to vector<16x128xf32>
    %5 = arith.addf %2, %4 : vector<16x128xf32>
    %c0_5 = arith.constant 0 : index
    %c0_6 = arith.constant 0 : index
    %6 = vector.load %arg5[%c0_5, %c0_6] : memref<16x128xf32, #tpu.memory_space<vmem>>, vector<16x128xf32>
    tpu.vector_store %arg5[%c0_5, %c0_6], %5 {strides = array<i32>} : memref<16x128xf32, #tpu.memory_space<vmem>>, vector<16x128xf32>,
    return
  }
  func.func @transform_0(%arg0: i32, %arg1: i32) -> (i32, i32) {
    %c0_i32 = arith.constant 0 : i32
    %c0_i32_0 = arith.constant 0 : i32
    return %arg1, %c0_i32 : i32, i32
  }
  func.func @transform_1(%arg0: i32, %arg1: i32) -> (i32, i32) {
    %c0_i32 = arith.constant 0 : i32
    %c0_i32_0 = arith.constant 0 : i32
    return %c0_i32, %arg0 : i32, i32
  }
  func.func @transform_2(%arg0: i32, %arg1: i32) -> (i32, i32) {
    %c0_i32 = arith.constant 0 : i32
    %c0_i32_0 = arith.constant 0 : i32
    return %arg1, %c0_i32 : i32, i32
  }
  func.func @transform_3(%arg0: i32, %arg1: i32) -> (i32, i32) {
    %c0_i32 = arith.constant 0 : i32
    return %arg1, %arg0 : i32, i32
  }
}

</mosaic_0001>

<bundles_post_ra>
// kernel: tpu_custom_call.1
= control target key start
LH: loop header
LB: loop body
LE: loop exit
PB: predicated region body
PF: predicated region fallthrough
CT: control target
= control target key end

     0   :  { %8 = vsyncpa [#allocation3], 0  ;;  %s319_s0 = inlined_call_operand.vmem [shape: bf16[16,128], index: 0, kind: input, shape index: {}]   ;;  %s320_s1 = inlined_call_operand.hbm [shape: bf16[128,128], index: 1, kind: input, shape index: {}]   ;;  %s321_s2 = inlined_call_operand.vmem [shape: f32[16,1], index: 2, kind: input, shape index: {}]   ;;  %s322_s3 = inlined_call_operand.hbm [shape: f32[16,128], index: 3, kind: output, shape index: {}]  }
   0x1   :  { %9 = vsyncpa [#allocation4], 0  ;;  %s275_s12 = smov [#allocation2]  }
   0x2   :  { %s17_s13 = sshll.u32 %s275_s12, 4  ;;  %s18_s13 = int_to_ptr.vmem [resolvable:$true] %s17_s13 }
   0x3   :  { %s239_s14 = scalar_lea.vmem %s18_s13, 1024  ;;  %p244_p1 = scmp.lt.s32.totalorder %s18_s13, %s18_s13 }
   0x4   :  { %p240_p0 = scmp.ne.s32.totalorder %s18_s13, %s239_s14  ;;  %p245_p2 = scmp.lt.s32.totalorder %s239_s14, %s239_s14 }
   0x6   :  { %p246_p3 = por %p245_p2, %p244_p1 }
   0x8   :  { %p247_p4 = pnand %p246_p3, %p240_p0 }
   0xa   :  { %250 = shalt.err (!%p247_p4)
}
   0xb   :  { %s276_s15 = smov 64   ;;  %s277_s16 = smov 4  }
   0xc   :  { %23 = dma.hbm_to_vmem [thread:$0]  %s320_s1, 1024, %s18_s13, [#allocation3], %s276_s15, %s276_s15, %s277_s16  }
   0xd   :  { %271 = dma.done.wait [#allocation3], 1024  }
   0xe   :  { %272 = vsyncadd [#allocation3], 4294966272  ;;  %v278_v0 = vmov 0.0   ;;  %vm279_vm0 = vmmov 0   ;;  %v280_v1 = vmov 0   ;;  %v222_v2 = vld [vmem:[#allocation2 + $0x38] sm:$0xff]  }
   0xf   :  { %192 = vmatprep.subr.bf16.mxu0 %v278_v0  ;;  %208 = vmatprep.mubr.msk.bf16.mxu0 %vm279_vm0, %v278_v0  ;;  %v223_v3 = vld [vmem:[#allocation2 + $0x30] sm:$0xff]   ;;  %v224_v4 = vld [vmem:[#allocation2 + $0x28] sm:$0xff]   ;;  %v48_v5 = vld [vmem:[%s321_s2] sm:$0xff] }
  0x10   :  { %221 = vset.pattern.permute.xlu0 %v280_v1  ;;  %193 = vmatpush3.bf16.msra.mxu0 %v222_v2  ;;  %v225_v6 = vld [vmem:[#allocation2 + $0x20] sm:$0xff]   ;;  %v49_v7 = vld [vmem:[%s321_s2 + $0x8] sm:$0xff]  ;;  %v226_v8 = vld [vmem:[#allocation2 + $0x18] sm:$0xff]   ;;  %s281_s2 = smov [#allocation5]  }
  0x11   :  { %194 = vmatprep.subr.bf16.mxu0 %v278_v0  ;;  %52 = vperm.xlu0 %221, %v48_v5   ;;  %v227_v9 = vld [vmem:[#allocation2 + $0x10] sm:$0xff]   ;;  %v228_v10 = vld [vmem:[#allocation2 + $0x8] sm:$0xff]   ;;  %v229_v11 = vld [vmem:[#allocation2] sm:$0xff]   ;;  %s162_s24 = sshll.u32 %s281_s2, 4  ;;  %s163_s24 = int_to_ptr.vmem [resolvable:$true] %s162_s24 }
  0x12   :  { %v230_v12 = vld [vmem:[%s319_s0] sm:$0xff]   ;;  %s251_s25 = scalar_lea.vmem %s163_s24, 256  ;;  %p256_p6 = scmp.lt.s32.totalorder %s163_s24, %s163_s24 }
  0x13   :  { %p252_p5 = scmp.ne.s32.totalorder %s163_s24, %s251_s25  ;;  %p257_p7 = scmp.lt.s32.totalorder %s251_s25, %s251_s25 }
  0x14   :  { %195 = vmatpush3.bf16.msra.mxu0 %v223_v3 }
  0x15   :  { %196 = vmatprep.subr.bf16.mxu0 %v278_v0  ;;  %57 = vperm.xlu0 %221, %v49_v7   ;;  %p258_p8 = por %p257_p7, %p256_p6 }
  0x17   :  { %p259_p9 = pnand %p258_p8, %p252_p5 }
  0x18   :  { %197 = vmatpush3.bf16.msra.mxu0 %v224_v4 }
  0x19   :  { %198 = vmatprep.subr.bf16.mxu0 %v278_v0 }
  0x1c   :  { %199 = vmatpush3.bf16.msra.mxu0 %v225_v6 }
  0x1d   :  { %200 = vmatprep.subr.bf16.mxu0 %v278_v0 }
  0x20   :  { %201 = vmatpush3.bf16.msra.mxu0 %v226_v8 }
  0x21   :  { %202 = vmatprep.subr.bf16.mxu0 %v278_v0 }
  0x24   :  { %203 = vmatpush3.bf16.msra.mxu0 %v227_v9 }
  0x25   :  { %204 = vmatprep.subr.bf16.mxu0 %v278_v0 }
  0x28   :  { %205 = vmatpush3.bf16.msra.mxu0 %v228_v10 }
  0x29   :  { %206 = vmatprep.subr.bf16.mxu0 %v278_v0 }
  0x2c   :  { %207 = vmatpush3.bf16.msra.mxu0 %v229_v11 }
  0x2f   :  { %209 = vmatmul.mubr.bf16.vlgmr.msra.gmra.mxu0 %v230_v12 }
  0x8c   :  { %v53_v13 = vpop.permute.xlu0 %52 }
  0x90   :  { %v58_v17 = vpop.permute.xlu0 %57 }
  0xef   :  { %v148_v14 = vpop.f32.mrf.mxu0 }
  0xf0   :  { %v149_v15 = vadd.f32 %v148_v14, %v53_v13 }
  0xf1   :  { %v210_v16 = vpop.f32.mrf.mxu0 }
  0xf2   :  { %155 = vst [vmem:[#allocation5] sm:$0xff] %v149_v15 }
  0xf3   :  { %v151_v18 = vpop.f32.mrf.mxu0 }
  0xf4   :  { %v152_v19 = vadd.f32 %v151_v18, %v58_v17 }
  0xf5   :  { %v211_v20 = vpop.f32.mrf.mxu0 }
  0xf6   :  { %156 = vst [vmem:[#allocation5 + $0x8] sm:$0xff] %v152_v19 }
  0xf7   :  { %262 = shalt.err (!%p259_p9)
}
  0xf8   :  { %s282_s0 = smov 128   ;;  %s283_s26 = smov 8  }
  0xf9   :  { %168 = dma.vmem_to_hbm [thread:$0]  %s163_s24, 256, %s322_s3, [#allocation4], %s282_s0, %s282_s0, %s283_s26  }
  0xfa   :  { %273 = dma.done.wait [#allocation4], 256  }
  0xfb   :  { %274 = vsyncadd [#allocation4], 4294967040 }
  0xfc   :  { %172 = vsyncpa [#allocation3], 1 }
  0xfd   :  { %173 = vsyncpa [#allocation4], 1 }

</bundles_post_ra>
